<compile_context>
chip_gen: v5e
topology: v5e:2x2
jax: 0.10.0
libtpu: 0.0.40
codegen_flags: <defaults>
</compile_context>

<pallas_src>
import jax
import jax.numpy as jnp
from jax.experimental import pallas as pl
from jax.experimental.pallas import tpu as pltpu


# ----------------------------- Pallas kernel ---------------------------------
def gcn2_kernel(adj_ref, dinv_ref, x_ref, w1_ref, b1_ref, w2_ref, b2_ref, out_ref):
    """Fused 2-layer GCN forward for ONE super-block of block-diagonally packed graphs.

    adj_ref:  [TM, TM]       bf16 raw adjacency counts (+ remaining self-loops)
    dinv_ref: [TM, 1]        f32  D^{-1/2} per node (0 for padding rows)
    x_ref:    [TM, Fin_p]    bf16 node features (zero-padded lanes)
    w1_ref:   [Fin_p, H_p]   bf16,  b1_ref: [1, H_p]    f32
    w2_ref:   [H_p, Fout_p]  bf16,  b2_ref: [1, Fout_p] f32
    out_ref:  [TM, Fout_p]   f32  (lane-dense; real rows/cols sliced in the wrapper)
    """
    dinv = dinv_ref[...]                                                   # [TM, 1] f32

    # Layer 1: transform -> D^{-1/2} -> propagate -> D^{-1/2} -> bias -> ReLU
    xw = jnp.dot(x_ref[...], w1_ref[...], preferred_element_type=jnp.float32)
    msg1 = (xw * dinv).astype(jnp.bfloat16)
    h = dinv * jnp.dot(adj_ref[...], msg1, preferred_element_type=jnp.float32)
    h = jnp.maximum(h + b1_ref[...], 0.0)

    # Layer 2: transform -> D^{-1/2} -> propagate -> D^{-1/2} -> bias
    hw = jnp.dot(h.astype(jnp.bfloat16), w2_ref[...], preferred_element_type=jnp.float32)
    msg2 = (hw * dinv).astype(jnp.bfloat16)
    out = dinv * jnp.dot(adj_ref[...], msg2, preferred_element_type=jnp.float32)
    out_ref[...] = (out + b2_ref[...]).astype(out_ref.dtype)


# ------------------------------ packing / wrapper ------------------------------
def _round_up(x, m):
    return (x + m - 1) // m * m


def pack_graph_batch(x_b, edge_index_b, *, fin_pad):
    """Pack B graphs block-diagonally into lane-dense super-blocks.

    x_b:          [B, N, Fin] f32 node features
    edge_index_b: [B, 2, E]   int32 edges (row 0 = src, row 1 = dst)

    Returns adj_sb [S,TM,TM] bf16, dinv_sb [S,TM,1] f32, x_sb [S,TM,fin_pad] bf16, layout.
    """
    B, N, fin = x_b.shape
    E = edge_index_b.shape[-1]
    n_pad = _round_up(N, 16)                       # bf16 sublane tile
    gpb = max(1, min(B, 128 // n_pad))             # graphs packed per super-block
    S = (B + gpb - 1) // gpb                       # grid steps
    TM = _round_up(gpb * n_pad, 128)               # lane-dense super-block node dim

    g = jnp.arange(B, dtype=jnp.int32)
    sb_of_g = g // gpb
    off_of_g = (g % gpb) * n_pad

    src = edge_index_b[:, 0, :]                    # [B, E]
    dst = edge_index_b[:, 1, :]
    sb_e = jnp.broadcast_to(sb_of_g[:, None], (B, E))
    rows = dst + off_of_g[:, None]                 # messages flow src -> dst
    cols = src + off_of_g[:, None]

    # Adjacency built directly at padded shape & final dtype: single scatter-ADD
    # (duplicate edges summed, matching PyG).  Counts are small ints -> exact in bf16.
    adj_sb = jnp.zeros((S, TM, TM), jnp.bfloat16)
    adj_sb = adj_sb.at[sb_e, rows, cols].add(jnp.ones((B, E), jnp.bfloat16))

    # add_remaining_self_loops: keep existing self-loop weight, add 1 only where missing.
    node = jnp.arange(N, dtype=jnp.int32)
    node_rows = node[None, :] + off_of_g[:, None]                  # [B, N]
    node_sb = jnp.broadcast_to(sb_of_g[:, None], (B, N))
    diag = adj_sb[node_sb, node_rows, node_rows]
    adj_sb = adj_sb.at[node_sb, node_rows, node_rows].set(
        jnp.maximum(diag, jnp.bfloat16(1.0)))

    deg = adj_sb.sum(axis=2, dtype=jnp.float32)                    # exact integer degrees
    dinv_sb = jnp.where(deg > 0.0, jax.lax.rsqrt(deg), 0.0)[..., None]   # [S, TM, 1]

    x_pack = jnp.zeros((S * gpb, n_pad, fin_pad), jnp.bfloat16)
    x_pack = x_pack.at[:B, :N, :fin].set(x_b.astype(jnp.bfloat16))
    x_sb = x_pack.reshape(S, gpb * n_pad, fin_pad)
    if TM > gpb * n_pad:
        x_sb = jnp.pad(x_sb, ((0, 0), (0, TM - gpb * n_pad), (0, 0)))

    return adj_sb, dinv_sb, x_sb, dict(B=B, N=N, n_pad=n_pad, gpb=gpb, S=S, TM=TM)


def gcn_forward_batched(x_b, edge_index_b, w1, b1, w2, b2):
    """Run B independent graphs through the fused 2-layer GCN in ONE pallas_call.

    x_b:          [B, N, Fin] f32,  edge_index_b: [B, 2, E] int32
    w1/b1/w2/b2:  shared GCN parameters (real, unpadded shapes)
    returns       [B, N, Fout] f32
    """
    B, N, fin = x_b.shape
    hid = w1.shape[1]
    fout = w2.shape[1]
    # Lane-dense feature dims. NOTE: kept at 128 multiples on purpose — padding tiny dims
    # (8/32/4) to 256 for v6e/v7x's 256-wide MXU would waste 4x; revisit for large dims.
    fin_pad, h_pad, fout_pad = (_round_up(d, 128) for d in (fin, hid, fout))

    adj_sb, dinv_sb, x_sb, L = pack_graph_batch(x_b, edge_index_b, fin_pad=fin_pad)
    S, TM, gpb, n_pad = L["S"], L["TM"], L["gpb"], L["n_pad"]

    w1_p = jnp.zeros((fin_pad, h_pad), jnp.bfloat16).at[:fin, :hid].set(w1.astype(jnp.bfloat16))
    w2_p = jnp.zeros((h_pad, fout_pad), jnp.bfloat16).at[:hid, :fout].set(w2.astype(jnp.bfloat16))
    b1_p = jnp.zeros((1, h_pad), jnp.float32).at[0, :hid].set(b1)
    b2_p = jnp.zeros((1, fout_pad), jnp.float32).at[0, :fout].set(b2)

    flops = 2 * S * (TM * fin_pad * h_pad        # X @ W1
                     + TM * TM * h_pad           # A @ (.)
                     + TM * h_pad * fout_pad     # H @ W2
                     + TM * TM * fout_pad)       # A @ (.)
    bytes_accessed = (adj_sb.size * 2 + x_sb.size * 2 + dinv_sb.size * 4
                      + w1_p.size * 2 + w2_p.size * 2 + b1_p.size * 4 + b2_p.size * 4
                      + S * TM * fout_pad * 4)

    out = pl.pallas_call(
        gcn2_kernel,
        out_shape=jax.ShapeDtypeStruct((S, TM, fout_pad), jnp.float32),
        grid_spec=pltpu.PrefetchScalarGridSpec(
            num_scalar_prefetch=0,
            grid=(S,),   # one super-block (many graphs) per step -> megacore-parallel
            in_specs=[
                pl.BlockSpec((None, TM, TM), lambda s: (s, 0, 0)),
                pl.BlockSpec((None, TM, 1), lambda s: (s, 0, 0)),
                pl.BlockSpec((None, TM, fin_pad), lambda s: (s, 0, 0)),
                pl.BlockSpec((fin_pad, h_pad), lambda s: (0, 0)),
                pl.BlockSpec((1, h_pad), lambda s: (0, 0)),
                pl.BlockSpec((h_pad, fout_pad), lambda s: (0, 0)),
                pl.BlockSpec((1, fout_pad), lambda s: (0, 0)),
            ],
            out_specs=pl.BlockSpec((None, TM, fout_pad), lambda s: (s, 0, 0)),
        ),
        compiler_params=pltpu.CompilerParams(
            dimension_semantics=("parallel",),
            # TODO(synk): for large graphs (super-block node count >> 1k) split the two
            # layers into two pallas_calls with node-row-tiled adjacency (VMEM O(TM*N)
            # instead of O(N^2)) and set vmem_limit_bytes explicitly — v7x has only 64 MiB
            # physical VMEM and v5e's scoped default is 16 MiB.
        ),
        cost_estimate=pl.CostEstimate(flops=flops, transcendentals=0,
                                      bytes_accessed=bytes_accessed),
    )(adj_sb, dinv_sb, x_sb, w1_p, b1_p, w2_p, b2_p)

    out = out[:, :gpb * n_pad, :].reshape(S * gpb, n_pad, fout_pad)
    return out[:B, :N, :fout]


def route_optimization_forward(x, edge_index, w1, b1, w2, b2):
    """Single-graph forward matching RouteOptimizationModel.forward(data)."""
    return gcn_forward_batched(x[None], edge_index[None], w1, b1, w2, b2)[0]


# ------------------------------ plain-JAX references ---------------------------
def glorot(key, shape):
    fan_in, fan_out = shape
    limit = jnp.sqrt(6.0 / (fan_in + fan_out))
    return jax.random.uniform(key, shape, jnp.float32, -limit, limit)


def _build_adj_f32(edge_index, num_nodes):
    a = jnp.zeros((num_nodes, num_nodes), jnp.float32)
    a = a.at[edge_index[1], edge_index[0]].add(1.0)
    idx = jnp.arange(num_nodes)
    a = a.at[idx, idx].set(jnp.maximum(jnp.diagonal(a), 1.0))   # add_remaining_self_loops
    return a


def reference_forward_f32(x, edge_index, w1, b1, w2, b2):
    """Full-f32 reference (PyG GCNConv semantics)."""
    N = x.shape[0]
    a = _build_adj_f32(edge_index, N)
    deg = a.sum(axis=1)
    dinv = jnp.where(deg > 0, 1.0 / jnp.sqrt(deg), 0.0)
    an = dinv[:, None] * a * dinv[None, :]
    h = jnp.maximum(an @ (x @ w1) + b1[None, :], 0.0)
    return an @ (h @ w2) + b2[None, :]


def reference_forward_bf16(x, edge_index, w1, b1, w2, b2):
    """Pure-JAX reference mirroring the kernel's bf16-operand / f32-accumulate math."""
    bf = jnp.bfloat16
    N = x.shape[0]
    a = _build_adj_f32(edge_index, N).astype(bf)                 # exact integer counts
    deg = a.sum(axis=1, dtype=jnp.float32)
    dinv = jnp.where(deg > 0, jax.lax.rsqrt(deg), 0.0)[:, None]
    xw = jnp.dot(x.astype(bf), w1.astype(bf), preferred_element_type=jnp.float32)
    h = dinv * jnp.dot(a, (xw * dinv).astype(bf), preferred_element_type=jnp.float32)
    h = jnp.maximum(h + b1[None, :], 0.0)
    hw = jnp.dot(h.astype(bf), w2.astype(bf), preferred_element_type=jnp.float32)
    out = dinv * jnp.dot(a, (hw * dinv).astype(bf), preferred_element_type=jnp.float32)
    return out + b2[None, :]


if __name__ == "__main__":
    # config = {'gnn': {'input_dim': 8, 'hidden_dim': 32, 'output_dim': 4, ...}}
    num_graphs = 4
    num_nodes = 16
    input_dim = 8
    hidden_dim = 32
    output_dim = 4
    num_edges = 40

    key = jax.random.PRNGKey(0)
    k_data, k_w1, k_w2 = jax.random.split(key, 3)

    # shared GCN parameters (GCNConv default: glorot weights, zero bias)
    w1 = glorot(k_w1, (input_dim, hidden_dim))
    b1 = jnp.zeros((hidden_dim,), jnp.float32)
    w2 = glorot(k_w2, (hidden_dim, output_dim))
    b2 = jnp.zeros((output_dim,), jnp.float32)

    # deterministic synthetic graph batch (data.x, data.edge_index per graph)
    xs, eis = [], []
    for kg in jax.random.split(k_data, num_graphs):
        k_x, k_e = jax.random.split(kg)
        xs.append(jax.random.normal(k_x, (num_nodes, input_dim), jnp.float32))
        eis.append(jax.random.randint(k_e, (2, num_edges), 0, num_nodes, dtype=jnp.int32))
    x_batch = jnp.stack(xs)
    ei_batch = jnp.stack(eis)

    # batched fused forward (all graphs packed block-diagonally into one super-block)
    out_batch = jax.block_until_ready(gcn_forward_batched(x_batch, ei_batch, w1, b1, w2, b2))
    assert out_batch.shape == (num_graphs, num_nodes, output_dim)

    # single-graph forward (the module's original interface) for graph 0
    out_single = jax.block_until_ready(
        route_optimization_forward(xs[0], eis[0], w1, b1, w2, b2))

    # correctness: tight vs bf16-mirrored reference, loose vs full-f32 reference
    ref_bf16 = jnp.stack([reference_forward_bf16(x, ei, w1, b1, w2, b2)
                          for x, ei in zip(xs, eis)])
    ref_f32 = jnp.stack([reference_forward_f32(x, ei, w1, b1, w2, b2)
                         for x, ei in zip(xs, eis)])
    assert jnp.allclose(out_batch, ref_bf16, atol=1e-2, rtol=1e-2), "mismatch vs bf16 reference"
    assert jnp.allclose(out_batch, ref_f32, atol=5e-2, rtol=5e-2), "mismatch vs f32 reference"
    assert jnp.allclose(out_single, out_batch[0], atol=1e-5, rtol=1e-5), "single-graph path mismatch"

    print("KERNEL_OK")
</pallas_src>

<mosaic_0001>
module attributes {stable_mosaic.version = 11 : i64} {
  func.func @gcn2_kernel(%arg0: i32, %arg1: memref<1x128x128xbf16, #tpu.memory_space<vmem>>, %arg2: memref<1x128x1xf32, #tpu.memory_space<vmem>>, %arg3: memref<1x128x128xbf16, #tpu.memory_space<vmem>>, %arg4: memref<128x128xbf16, #tpu.memory_space<vmem>>, %arg5: memref<1x128xf32, #tpu.memory_space<vmem>>, %arg6: memref<128x128xbf16, #tpu.memory_space<vmem>>, %arg7: memref<1x128xf32, #tpu.memory_space<vmem>>, %arg8: memref<1x128x128xf32, #tpu.memory_space<vmem>>) attributes {dimension_semantics = [#tpu.dimension_semantics<parallel>], iteration_bounds = array<i64: 1>, scalar_prefetch = 0 : i64, scratch_operands = 0 : i64, tpu.core_type = #tpu.core_type<tc>, window_params = [{transform_indices = @transform_0, window_bounds = array<i64: 1, 128, 128>}, {transform_indices = @transform_1, window_bounds = array<i64: 1, 128, 1>}, {transform_indices = @transform_2, window_bounds = array<i64: 1, 128, 128>}, {pipeline_mode = #tpu.pipeline_mode<synchronous>, transform_indices = @transform_3, window_bounds = array<i64: 128, 128>}, {pipeline_mode = #tpu.pipeline_mode<synchronous>, transform_indices = @transform_4, window_bounds = array<i64: 1, 128>}, {pipeline_mode = #tpu.pipeline_mode<synchronous>, transform_indices = @transform_5, window_bounds = array<i64: 128, 128>}, {pipeline_mode = #tpu.pipeline_mode<synchronous>, transform_indices = @transform_6, window_bounds = array<i64: 1, 128>}, {transform_indices = @transform_7, window_bounds = array<i64: 1, 128, 128>}]} {
    %c0 = arith.constant 0 : index
    %c0_0 = arith.constant 0 : index
    %c0_1 = arith.constant 0 : index
    %0 = vector.load %arg2[%c0, %c0_0, %c0_1] : memref<1x128x1xf32, #tpu.memory_space<vmem>>, vector<1x128x1xf32>
    %1 = vector.shape_cast %0 : vector<1x128x1xf32> to vector<128x1xf32>
    %c0_2 = arith.constant 0 : index
    %c0_3 = arith.constant 0 : index
    %c0_4 = arith.constant 0 : index
    %2 = vector.load %arg3[%c0_2, %c0_3, %c0_4] : memref<1x128x128xbf16, #tpu.memory_space<vmem>>, vector<1x128x128xbf16>
    %3 = vector.shape_cast %2 : vector<1x128x128xbf16> to vector<128x128xbf16>
    %c0_5 = arith.constant 0 : index
    %c0_6 = arith.constant 0 : index
    %4 = vector.load %arg4[%c0_5, %c0_6] : memref<128x128xbf16, #tpu.memory_space<vmem>>, vector<128x128xbf16>
    %cst = arith.constant dense<0.000000e+00> : vector<128x128xf32>
    %5 = tpu.matmul %3, %4, %cst {dimension_numbers = #tpu.dot_dimension_numbers<[1], [0], [0], [1], [0, 0, 1, 1], [], []>} : vector<128x128xbf16>, vector<128x128xbf16>, vector<128x128xf32> -> vector<128x128xf32>
    %6 = vector.broadcast %1 : vector<128x1xf32> to vector<128x128xf32>
    %7 = arith.mulf %5, %6 : vector<128x128xf32>
    %8 = arith.truncf %7 : vector<128x128xf32> to vector<128x128xbf16>
    %c0_7 = arith.constant 0 : index
    %c0_8 = arith.constant 0 : index
    %c0_9 = arith.constant 0 : index
    %9 = vector.load %arg1[%c0_7, %c0_8, %c0_9] : memref<1x128x128xbf16, #tpu.memory_space<vmem>>, vector<1x128x128xbf16>
    %10 = vector.shape_cast %9 : vector<1x128x128xbf16> to vector<128x128xbf16>
    %cst_10 = arith.constant dense<0.000000e+00> : vector<128x128xf32>
    %11 = tpu.matmul %10, %8, %cst_10 {dimension_numbers = #tpu.dot_dimension_numbers<[1], [0], [0], [1], [0, 0, 1, 1], [], []>} : vector<128x128xbf16>, vector<128x128xbf16>, vector<128x128xf32> -> vector<128x128xf32>
    %12 = vector.broadcast %1 : vector<128x1xf32> to vector<128x128xf32>
    %13 = arith.mulf %12, %11 : vector<128x128xf32>
    %c0_11 = arith.constant 0 : index
    %c0_12 = arith.constant 0 : index
    %14 = vector.load %arg5[%c0_11, %c0_12] : memref<1x128xf32, #tpu.memory_space<vmem>>, vector<1x128xf32>
    %15 = vector.broadcast %14 : vector<1x128xf32> to vector<128x128xf32>
    %16 = arith.addf %13, %15 : vector<128x128xf32>
    %cst_13 = arith.constant 0.000000e+00 : f32
    %17 = vector.broadcast %cst_13 : f32 to vector<128x128xf32>
    %18 = arith.maximumf %16, %17 : vector<128x128xf32>
    %19 = arith.truncf %18 : vector<128x128xf32> to vector<128x128xbf16>
    %c0_14 = arith.constant 0 : index
    %c0_15 = arith.constant 0 : index
    %20 = vector.load %arg6[%c0_14, %c0_15] : memref<128x128xbf16, #tpu.memory_space<vmem>>, vector<128x128xbf16>
    %cst_16 = arith.constant dense<0.000000e+00> : vector<128x128xf32>
    %21 = tpu.matmul %19, %20, %cst_16 {dimension_numbers = #tpu.dot_dimension_numbers<[1], [0], [0], [1], [0, 0, 1, 1], [], []>} : vector<128x128xbf16>, vector<128x128xbf16>, vector<128x128xf32> -> vector<128x128xf32>
    %22 = vector.broadcast %1 : vector<128x1xf32> to vector<128x128xf32>
    %23 = arith.mulf %21, %22 : vector<128x128xf32>
    %24 = arith.truncf %23 : vector<128x128xf32> to vector<128x128xbf16>
    %c0_17 = arith.constant 0 : index
    %c0_18 = arith.constant 0 : index
    %c0_19 = arith.constant 0 : index
    %25 = vector.load %arg1[%c0_17, %c0_18, %c0_19] : memref<1x128x128xbf16, #tpu.memory_space<vmem>>, vector<1x128x128xbf16>
    %26 = vector.shape_cast %25 : vector<1x128x128xbf16> to vector<128x128xbf16>
    %cst_20 = arith.constant dense<0.000000e+00> : vector<128x128xf32>
    %27 = tpu.matmul %26, %24, %cst_20 {dimension_numbers = #tpu.dot_dimension_numbers<[1], [0], [0], [1], [0, 0, 1, 1], [], []>} : vector<128x128xbf16>, vector<128x128xbf16>, vector<128x128xf32> -> vector<128x128xf32>
    %28 = vector.broadcast %1 : vector<128x1xf32> to vector<128x128xf32>
    %29 = arith.mulf %28, %27 : vector<128x128xf32>
    %c0_21 = arith.constant 0 : index
    %c0_22 = arith.constant 0 : index
    %30 = vector.load %arg7[%c0_21, %c0_22] : memref<1x128xf32, #tpu.memory_space<vmem>>, vector<1x128xf32>
    %31 = vector.broadcast %30 : vector<1x128xf32> to vector<128x128xf32>
    %32 = arith.addf %29, %31 : vector<128x128xf32>
    %c0_23 = arith.constant 0 : index
    %c0_24 = arith.constant 0 : index
    %c0_25 = arith.constant 0 : index
    %33 = vector.load %arg8[%c0_23, %c0_24, %c0_25] : memref<1x128x128xf32, #tpu.memory_space<vmem>>, vector<1x128x128xf32>
    %34 = vector.shape_cast %33 : vector<1x128x128xf32> to vector<128x128xf32>
    %35 = vector.shape_cast %32 : vector<128x128xf32> to vector<1x128x128xf32>
    tpu.vector_store %arg8[%c0_23, %c0_24, %c0_25], %35 {strides = array<i32>} : memref<1x128x128xf32, #tpu.memory_space<vmem>>, vector<1x128x128xf32>,
    return
  }
  func.func @transform_0(%arg0: i32) -> (i32, i32, i32) {
    %c0_i32 = arith.constant 0 : i32
    %c0_i32_0 = arith.constant 0 : i32
    %c0_i32_1 = arith.constant 0 : i32
    return %arg0, %c0_i32, %c0_i32_0 : i32, i32, i32
  }
  func.func @transform_1(%arg0: i32) -> (i32, i32, i32) {
    %c0_i32 = arith.constant 0 : i32
    %c0_i32_0 = arith.constant 0 : i32
    %c0_i32_1 = arith.constant 0 : i32
    return %arg0, %c0_i32, %c0_i32_0 : i32, i32, i32
  }
  func.func @transform_2(%arg0: i32) -> (i32, i32, i32) {
    %c0_i32 = arith.constant 0 : i32
    %c0_i32_0 = arith.constant 0 : i32
    %c0_i32_1 = arith.constant 0 : i32
    return %arg0, %c0_i32, %c0_i32_0 : i32, i32, i32
  }
  func.func @transform_3(%arg0: i32) -> (i32, i32) {
    %c0_i32 = arith.constant 0 : i32
    %c0_i32_0 = arith.constant 0 : i32
    %c0_i32_1 = arith.constant 0 : i32
    return %c0_i32, %c0_i32_0 : i32, i32
  }
  func.func @transform_4(%arg0: i32) -> (i32, i32) {
    %c0_i32 = arith.constant 0 : i32
    %c0_i32_0 = arith.constant 0 : i32
    %c0_i32_1 = arith.constant 0 : i32
    return %c0_i32, %c0_i32_0 : i32, i32
  }
  func.func @transform_5(%arg0: i32) -> (i32, i32) {
    %c0_i32 = arith.constant 0 : i32
    %c0_i32_0 = arith.constant 0 : i32
    %c0_i32_1 = arith.constant 0 : i32
    return %c0_i32, %c0_i32_0 : i32, i32
  }
  func.func @transform_6(%arg0: i32) -> (i32, i32) {
    %c0_i32 = arith.constant 0 : i32
    %c0_i32_0 = arith.constant 0 : i32
    %c0_i32_1 = arith.constant 0 : i32
    return %c0_i32, %c0_i32_0 : i32, i32
  }
  func.func @transform_7(%arg0: i32) -> (i32, i32, i32) {
    %c0_i32 = arith.constant 0 : i32
    %c0_i32_0 = arith.constant 0 : i32
    %c0_i32_1 = arith.constant 0 : i32
    return %arg0, %c0_i32, %c0_i32_0 : i32, i32, i32
  }
}

</mosaic_0001>

<bundles_post_ra>
// kernel: tpu_custom_call.1
= control target key start
LH: loop header
LB: loop body
LE: loop exit
PB: predicated region body
PF: predicated region fallthrough
CT: control target
= control target key end

     0   :  { %12 = vsyncpa [#allocation3], 0  ;;  %s1361_s0 = inlined_call_operand.vmem [shape: bf16[1,128,128], index: 0, kind: input, shape index: {}]   ;;  %s1362_s1 = inlined_call_operand.vmem [shape: f32[1,128,1], index: 1, kind: input, shape index: {}]   ;;  %s1363_s2 = inlined_call_operand.vmem [shape: bf16[1,128,128], index: 2, kind: input, shape index: {}]   ;;  %s1364_s3 = inlined_call_operand.hbm [shape: bf16[128,128], index: 3, kind: input, shape index: {}]   ;;  %s1365_s4 = inlined_call_operand.vmem [shape: f32[1,128], index: 4, kind: input, shape index: {}]   ;;  %s1366_s5 = inlined_call_operand.hbm [shape: bf16[128,128], index: 5, kind: input, shape index: {}]   ;;  %s1367_s6 = inlined_call_operand.vmem [shape: f32[1,128], index: 6, kind: input, shape index: {}]   ;;  %s1368_s7 = inlined_call_operand.hbm [shape: f32[1,128,128], index: 7, kind: output, shape index: {}]  }
   0x1   :  { %13 = vsyncpa [#allocation6], 0 }
   0x2   :  { %14 = vsyncpa [#allocation4], 0  ;;  %s25_s26 = sshll.u32 %s1364_s3, 4  ;;  %s1038_s27 = smov [#allocation2]   ;;  %s26_s26 = int_to_ptr.hbm [resolvable:$true] %s25_s26 }
   0x3   :  { %s27_s28 = sshll.u32 %s1038_s27, 4  ;;  %s40_s8 = sshll.u32 %s1366_s5, 4  ;;  %s28_s28 = int_to_ptr.vmem [resolvable:$true] %s27_s28  ;;  %s41_s8 = int_to_ptr.hbm [resolvable:$true] %s40_s8 }
   0x4   :  { %s1039_s9 = smov 64   ;;  %s1040_s10 = smov 4  }
   0x5   :  { %33 = dma.hbm_to_vmem [thread:$0]  %s26_s26, 1024, %s28_s28, [#allocation3], %s1039_s9, %s1039_s9, %s1040_s10  }
   0x6   :  { %s1041_s11 = smov [#allocation5]  }
   0x7   :  { %s42_s12 = sshll.u32 %s1041_s11, 4  ;;  %s43_s12 = int_to_ptr.vmem [resolvable:$true] %s42_s12 }
   0x8   :  { %48 = dma.hbm_to_vmem [thread:$0]  %s41_s8, 1024, %s43_s12, [#allocation6], %s1039_s9, %s1039_s9, %s1040_s10  }
   0x9   :  { %1032 = dma.done.wait [#allocation3], 1024  }
   0xa   :  { %1033 = vsyncadd [#allocation3], 4294966272 }
   0xb   :  { %1034 = dma.done.wait [#allocation6], 1024  }
   0xc   :  { %1035 = vsyncadd [#allocation6], 4294966272  ;;  %v1042_v0 = vmov 0   ;;  %v930_v1 = vld [vmem:[#allocation2 + $0x38] sm:$0xff]  ;;  %v73_v2 = vld [vmem:[%s1362_s1 + $0x70] sm:$0xff]  ;;  %s1044_s28 = smov 128  }
   0xd   :  { %955 = vset.pattern.permute.xlu0 %v1042_v0  ;;  %957 = vset.pattern.permute.xlu2 %v1042_v0  ;;  %v929_v3 = vld [vmem:[#allocation2 + $0x30] sm:$0xff]  ;;  %v71_v4 = vld [vmem:[%s1362_s1 + $0x60] sm:$0xff]  ;;  %v928_v6 = vld [vmem:[#allocation2 + $0x28] sm:$0xff]  ;;  %s1045_s29 = smov 8  }
   0xe   :  { %956 = vset.pattern.permute.xlu1 %v1042_v0  ;;  %203 = vmatpush.bf16.msra.mxu0 %v930_v1  ;;  %v69_v5 = vld [vmem:[%s1362_s1 + $0x50] sm:$0xff]  ;;  %v74_v7 = vld [vmem:[%s1362_s1 + $0x78] sm:$0xff]  ;;  %v927_v8 = vld [vmem:[#allocation2 + $0x20] sm:$0xff] }
   0xf   :  { %324 = vperm.xlu0 %955, %v73_v2   ;;  %314 = vperm.xlu1 %956, %v71_v4   ;;  %v72_v9 = vld [vmem:[%s1362_s1 + $0x68] sm:$0xff]  ;;  %v70_v10 = vld [vmem:[%s1362_s1 + $0x58] sm:$0xff]  ;;  %v67_v12 = vld [vmem:[%s1362_s1 + $0x40] sm:$0xff] }
  0x10   :  { %304 = vperm.xlu2 %957, %v69_v5   ;;  %v926_v11 = vld [vmem:[#allocation2 + $0x18] sm:$0xff]  ;;  %v925_v13 = vld [vmem:[#allocation2 + $0x10] sm:$0xff]  ;;  %v68_v14 = vld [vmem:[%s1362_s1 + $0x48] sm:$0xff] }
  0x11   :  { %v65_v15 = vld [vmem:[%s1362_s1 + $0x30] sm:$0xff]  ;;  %v924_v16 = vld [vmem:[#allocation2 + $0x8] sm:$0xff]  ;;  %v66_v17 = vld [vmem:[%s1362_s1 + $0x38] sm:$0xff] }
  0x12   :  { %204 = vmatpush.bf16.msra.mxu0 %v929_v3  ;;  %v923_v18 = vld [vmem:[#allocation2] sm:$0xff]  ;;  %v64_v19 = vld [vmem:[%s1362_s1 + $0x28] sm:$0xff]  ;;  %v61_v22 = vld [vmem:[%s1362_s1 + $0x10] sm:$0xff] }
  0x13   :  { %v63_v20 = vld [vmem:[%s1362_s1 + $0x20] sm:$0xff]  ;;  %v62_v23 = vld [vmem:[%s1362_s1 + $0x18] sm:$0xff]  ;;  %v60_v25 = vld [vmem:[%s1362_s1 + $0x8] sm:$0xff] }
  0x14   :  { %v915_v21 = vld [vmem:[%s1363_s2] sm:$0xff]  ;;  %v916_v26 = vld [vmem:[%s1363_s2 + $0x8] sm:$0xff]  ;;  %v917_v27 = vld [vmem:[%s1363_s2 + $0x10] sm:$0xff] }
  0x15   :  { %v59_v24 = vld [vmem:[%s1362_s1] sm:$0xff]  ;;  %v918_v28 = vld [vmem:[%s1363_s2 + $0x18] sm:$0xff]  ;;  %v920_v30 = vld [vmem:[%s1363_s2 + $0x28] sm:$0xff]  ;;  %s773_s1 = sshll.u32 %s1368_s7, 4  ;;  %s774_s1 = int_to_ptr.hbm [resolvable:$true] %s773_s1 }
  0x16   :  { %205 = vmatpush.bf16.msra.mxu0 %v928_v6  ;;  %v919_v29 = vld [vmem:[%s1363_s2 + $0x20] sm:$0xff]  ;;  %v921_v34 = vld [vmem:[%s1363_s2 + $0x30] sm:$0xff]  ;;  %v922_v38 = vld [vmem:[%s1363_s2 + $0x38] sm:$0xff] }
  0x17   :  { %329 = vperm.xlu0 %955, %v74_v7   ;;  %319 = vperm.xlu1 %956, %v72_v9  }
  0x18   :  { %309 = vperm.xlu2 %957, %v70_v10  }
  0x1a   :  { %206 = vmatpush.bf16.msra.mxu0 %v927_v8 }
  0x1e   :  { %207 = vmatpush.bf16.msra.mxu0 %v926_v11 }
  0x1f   :  { %294 = vperm.xlu0 %955, %v67_v12   ;;  %299 = vperm.xlu1 %956, %v68_v14  }
  0x20   :  { %284 = vperm.xlu2 %957, %v65_v15  }
  0x22   :  { %208 = vmatpush.bf16.msra.mxu0 %v925_v13 }
  0x26   :  { %209 = vmatpush.bf16.msra.mxu0 %v924_v16 }
  0x27   :  { %289 = vperm.xlu0 %955, %v66_v17   ;;  %274 = vperm.xlu1 %956, %v63_v20  }
  0x28   :  { %279 = vperm.xlu2 %957, %v64_v19  }
  0x2a   :  { %210 = vmatpush.bf16.msra.mxu0 %v923_v18 }
  0x2d   :  { %211 = vmatmul.bf16.vlgmr.msra.gmra.mxu0 %v915_v21 }
  0x2f   :  { %264 = vperm.xlu0 %955, %v61_v22   ;;  %269 = vperm.xlu1 %956, %v62_v23  }
  0x30   :  { %254 = vperm.xlu2 %957, %v59_v24  }
  0x37   :  { %259 = vperm.xlu0 %955, %v60_v25   ;;  %v1215_v25 = vld [vmem:[%s1361_s0] sm:$0xff] }
  0x3d   :  { %216 = vmatmul.bf16.gmra.mxu0 %v916_v26  ;;  %v1221_v26 = vld [vmem:[%s1361_s0 + $0x8] sm:$0xff] }
  0x4d   :  { %221 = vmatmul.bf16.gmra.mxu0 %v917_v27  ;;  %v1227_v27 = vld [vmem:[%s1361_s0 + $0x10] sm:$0xff] }
  0x5d   :  { %226 = vmatmul.bf16.gmra.mxu0 %v918_v28  ;;  %v1233_v28 = vld [vmem:[%s1361_s0 + $0x18] sm:$0xff] }
  0x6a   :  { %v1160_v32 = vpop.permute.xlu2 %304 }
  0x6d   :  { %231 = vmatmul.bf16.gmra.mxu0 %v919_v29  ;;  %v1239_v29 = vld [vmem:[%s1361_s0 + $0x20] sm:$0xff] }
  0x72   :  { %v1167_v35 = vpop.permute.xlu2 %309 }
  0x7a   :  { %v1176_v39 = vpop.permute.xlu2 %284 }
  0x7d   :  { %236 = vmatmul.bf16.gmra.mxu0 %v920_v30  ;;  %v946_v30 = vld [vmem:[#allocation5 + $0x38] sm:$0xff] }
  0x7e   :  { %593 = vmatpush.bf16.msra.mxu2 %v946_v30 }
  0x81   :  { %v1158_v31 = vpop.permute.xlu0 %324  ;;  %v1171_v37 = vpop.permute.xlu1 %314 }
  0x82   :  { %v1182_v42 = vpop.permute.xlu2 %279 }
  0x89   :  { %v1162_v33 = vpop.permute.xlu0 %329  ;;  %v1180_v41 = vpop.permute.xlu1 %319 }
  0x8a   :  { %v1188_v46 = vpop.permute.xlu2 %254 }
  0x8d   :  { %241 = vmatmul.bf16.gmra.mxu0 %v921_v34  ;;  %v1245_v34 = vld [vmem:[%s1361_s0 + $0x28] sm:$0xff] }
  0x91   :  { %v1169_v36 = vpop.permute.xlu0 %294  ;;  %v1186_v45 = vpop.permute.xlu1 %299 }
  0x99   :  { %v1178_v40 = vpop.permute.xlu0 %289  ;;  %v1194_v52 = vpop.permute.xlu1 %274 }
  0x9d   :  { %246 = vmatmul.bf16.gmra.mxu0 %v922_v38  ;;  %v945_v38 = vld [vmem:[#allocation5 + $0x30] sm:$0xff] }
  0x9e   :  { %594 = vmatpush.bf16.msra.mxu2 %v945_v38 }
  0xa1   :  { %v1184_v43 = vpop.permute.xlu0 %264  ;;  %v1196_v54 = vpop.permute.xlu1 %269 }
  0xa9   :  { %v1190_v47 = vpop.permute.xlu0 %259 }
  0xaa   :  { %v212_v44 = vpop.f32.mrf.mxu0 }
  0xab   :  { %v332_v49 = vmul.f32 %v1188_v46, %v212_v44  ;;  %v944_v44 = vld [vmem:[#allocation5 + $0x28] sm:$0xff] }
  0xac   :  { %595 = vmatpush.bf16.msra.mxu2 %v944_v44 }
  0xb2   :  { %v214_v48 = vpop.f32.mrf.mxu0 }
  0xb3   :  { %v333_v50 = vmul.f32 %v1190_v47, %v214_v48  ;;  %v943_v48 = vld [vmem:[#allocation5 + $0x20] sm:$0xff] }
  0xb4   :  { %596 = vmatpush.bf16.msra.mxu2 %v943_v48 }
  0xb5   :  { %v348_v51 = vpack.c.bf16 %v333_v50, %v332_v49  ;;  %v1251_v49 = vld [vmem:[%s1361_s0 + $0x30] sm:$0xff]  ;;  %v942_v50 = vld [vmem:[#allocation5 + $0x18] sm:$0xff] }
  0xb8   :  { %597 = vmatpush.bf16.msra.mxu2 %v942_v50 }
  0xba   :  { %v217_v53 = vpop.f32.mrf.mxu0 }
  0xbb   :  { %v334_v56 = vmul.f32 %v1184_v43, %v217_v53  ;;  %v940_v53 = vld [vmem:[#allocation5 + $0x8] sm:$0xff] }
  0xc2   :  { %v219_v55 = vpop.f32.mrf.mxu0 }
  0xc3   :  { %v335_v57 = vmul.f32 %v1196_v54, %v219_v55  ;;  %v939_v55 = vld [vmem:[#allocation5] sm:$0xff] }
  0xc5   :  { %v349_v58 = vpack.c.bf16 %v335_v57, %v334_v56  ;;  %v1257_v56 = vld [vmem:[%s1361_s0 + $0x38] sm:$0xff] }
  0xca   :  { %v222_v59 = vpop.f32.mrf.mxu0 }
  0xcb   :  { %v336_v61 = vmul.f32 %v1194_v52, %v222_v59  ;;  %v1264_v59 = vld [vmem:[%s1365_s4] ss:$0 sm:$0xff] }
  0xd2   :  { %v224_v60 = vpop.f32.mrf.mxu0 }
  0xd3   :  { %v337_v62 = vmul.f32 %v1182_v42, %v224_v60 }
  0xd5   :  { %v350_v63 = vpack.c.bf16 %v337_v62, %v336_v61 }
  0xda   :  { %v227_v0 = vpop.f32.mrf.mxu0 }
  0xdb   :  { %v338_v2 = vmul.f32 %v1176_v39, %v227_v0 }
  0xe2   :  { %v229_v1 = vpop.f32.mrf.mxu0 }
  0xe3   :  { %v339_v3 = vmul.f32 %v1178_v40, %v229_v1 }
  0xe5   :  { %v351_v4 = vpack.c.bf16 %v339_v3, %v338_v2 }
  0xea   :  { %v232_v5 = vpop.f32.mrf.mxu0 }
  0xeb   :  { %v340_v23 = vmul.f32 %v1169_v36, %v232_v5 }
  0xf2   :  { %v234_v6 = vpop.f32.mrf.mxu0 }
  0xf3   :  { %v341_v21 = vmul.f32 %v1186_v45, %v234_v6 }
  0xf5   :  { %v352_v24 = vpack.c.bf16 %v341_v21, %v340_v23 }
  0xfa   :  { %v237_v7 = vpop.f32.mrf.mxu0 }
  0xfb   :  { %v342_v20 = vmul.f32 %v1160_v32, %v237_v7 }
 0x102   :  { %v239_v8 = vpop.f32.mrf.mxu0 }
 0x103   :  { %v343_v18 = vmul.f32 %v1167_v35, %v239_v8 }
 0x105   :  { %v353_v22 = vpack.c.bf16 %v343_v18, %v342_v20 }
 0x10a   :  { %v242_v9 = vpop.f32.mrf.mxu0 }
 0x10b   :  { %v344_v17 = vmul.f32 %v1171_v37, %v242_v9 }
 0x112   :  { %v244_v10 = vpop.f32.mrf.mxu0 }
 0x113   :  { %v345_v15 = vmul.f32 %v1180_v41, %v244_v10 }
 0x115   :  { %v354_v19 = vpack.c.bf16 %v345_v15, %v344_v17 }
 0x11a   :  { %v247_v11 = vpop.f32.mrf.mxu0 }
 0x11b   :  { %v346_v13 = vmul.f32 %v1158_v31, %v247_v11 }
 0x122   :  { %v249_v12 = vpop.f32.mrf.mxu0 }
 0x123   :  { %v347_v14 = vmul.f32 %v1162_v33, %v249_v12 }
 0x125   :  { %v355_v16 = vpack.c.bf16 %v347_v14, %v346_v13 }
 0x127   :  { %420 = vmatpush.bf16.msra.mxu1 %v355_v16 }
 0x12b   :  { %421 = vmatpush.bf16.msra.mxu1 %v354_v19 }
 0x12f   :  { %422 = vmatpush.bf16.msra.mxu1 %v353_v22 }
 0x133   :  { %423 = vmatpush.bf16.msra.mxu1 %v352_v24 }
 0x137   :  { %424 = vmatpush.bf16.msra.mxu1 %v351_v4 }
 0x13b   :  { %425 = vmatpush.bf16.msra.mxu1 %v350_v63 }
 0x13f   :  { %426 = vmatpush.bf16.msra.mxu1 %v349_v58 }
 0x143   :  { %427 = vmatpush.bf16.msra.mxu1 %v348_v51  ;;  %v941_v51 = vld [vmem:[#allocation5 + $0x10] sm:$0xff] }
 0x144   :  { %598 = vmatpush.bf16.msra.mxu2 %v941_v51 }
 0x146   :  { %428 = vmatmul.bf16.vlgmr.msra.gmra.mxu1 %v1215_v25 }
 0x148   :  { %599 = vmatpush.bf16.msra.mxu2 %v940_v53 }
 0x14c   :  { %600 = vmatpush.bf16.msra.mxu2 %v939_v55 }
 0x156   :  { %433 = vmatmul.bf16.gmra.mxu1 %v1221_v26 }
 0x166   :  { %438 = vmatmul.bf16.gmra.mxu1 %v1227_v27 }
 0x176   :  { %443 = vmatmul.bf16.gmra.mxu1 %v1233_v28 }
 0x186   :  { %448 = vmatmul.bf16.gmra.mxu1 %v1239_v29 }
 0x196   :  { %453 = vmatmul.bf16.gmra.mxu1 %v1245_v34 }
 0x1a6   :  { %458 = vmatmul.bf16.gmra.mxu1 %v1251_v49 }
 0x1b6   :  { %463 = vmatmul.bf16.gmra.mxu1 %v1257_v56 }
 0x1c3   :  { %v429_v57 = vpop.f32.mrf.mxu1 }
 0x1c4   :  { %v469_v58 = vmul.f32 %v429_v57, %v1188_v46 }
 0x1c6   :  { %v489_v61 = vadd.f32 %v1264_v59, %v469_v58 }
 0x1c8   :  { %v505_v0 = vmax.f32 %v489_v61, 0.0 }
 0x1cb   :  { %v431_v60 = vpop.f32.mrf.mxu1 }
 0x1cc   :  { %v470_v62 = vmul.f32 %v431_v60, %v1190_v47 }
 0x1ce   :  { %v490_v63 = vadd.f32 %v1264_v59, %v470_v62 }
 0x1d0   :  { %v506_v1 = vmax.f32 %v490_v63, 0.0 }
 0x1d2   :  { %v521_v2 = vpack.c.bf16 %v506_v1, %v505_v0 }
 0x1d3   :  { %v434_v3 = vpop.f32.mrf.mxu1 }
 0x1d4   :  { %601 = vmatmul.bf16.vlgmr.msra.gmra.mxu2 %v521_v2  ;;  %v471_v4 = vmul.f32 %v434_v3, %v1184_v43 }
 0x1d6   :  { %v491_v6 = vadd.f32 %v1264_v59, %v471_v4 }
 0x1d8   :  { %v507_v9 = vmax.f32 %v491_v6, 0.0 }
 0x1db   :  { %v436_v5 = vpop.f32.mrf.mxu1 }
 0x1dc   :  { %v472_v7 = vmul.f32 %v436_v5, %v1196_v54 }
 0x1de   :  { %v492_v8 = vadd.f32 %v1264_v59, %v472_v7 }
 0x1e0   :  { %v508_v10 = vmax.f32 %v492_v8, 0.0 }
 0x1e2   :  { %v522_v11 = vpack.c.bf16 %v508_v10, %v507_v9 }
 0x1e3   :  { %v439_v12 = vpop.f32.mrf.mxu1 }
 0x1e4   :  { %606 = vmatmul.bf16.gmra.mxu2 %v522_v11  ;;  %v473_v13 = vmul.f32 %v439_v12, %v1194_v52 }
 0x1e6   :  { %v493_v15 = vadd.f32 %v1264_v59, %v473_v13 }
 0x1e8   :  { %v509_v18 = vmax.f32 %v493_v15, 0.0 }
 0x1eb   :  { %v441_v14 = vpop.f32.mrf.mxu1 }
 0x1ec   :  { %v474_v16 = vmul.f32 %v441_v14, %v1182_v42 }
 0x1ee   :  { %v494_v17 = vadd.f32 %v1264_v59, %v474_v16 }
 0x1f0   :  { %v510_v19 = vmax.f32 %v494_v17, 0.0 }
 0x1f2   :  { %v523_v20 = vpack.c.bf16 %v510_v19, %v509_v18 }
 0x1f3   :  { %v444_v21 = vpop.f32.mrf.mxu1 }
 0x1f4   :  { %611 = vmatmul.bf16.gmra.mxu2 %v523_v20  ;;  %v475_v22 = vmul.f32 %v444_v21, %v1176_v39 }
 0x1f6   :  { %v495_v24 = vadd.f32 %v1264_v59, %v475_v22 }
 0x1f8   :  { %v511_v44 = vmax.f32 %v495_v24, 0.0 }
 0x1fb   :  { %v446_v23 = vpop.f32.mrf.mxu1 }
 0x1fc   :  { %v476_v30 = vmul.f32 %v446_v23, %v1178_v40 }
 0x1fe   :  { %v496_v38 = vadd.f32 %v1264_v59, %v476_v30 }
 0x200   :  { %v512_v48 = vmax.f32 %v496_v38, 0.0 }
 0x202   :  { %v524_v50 = vpack.c.bf16 %v512_v48, %v511_v44 }
 0x203   :  { %v449_v51 = vpop.f32.mrf.mxu1 }
 0x204   :  { %616 = vmatmul.bf16.gmra.mxu2 %v524_v50  ;;  %v477_v53 = vmul.f32 %v449_v51, %v1169_v36 }
 0x206   :  { %v497_v57 = vadd.f32 %v1264_v59, %v477_v53 }
 0x208   :  { %v513_v61 = vmax.f32 %v497_v57, 0.0 }
 0x20b   :  { %v451_v55 = vpop.f32.mrf.mxu1 }
 0x20c   :  { %v478_v58 = vmul.f32 %v451_v55, %v1186_v45 }
 0x20e   :  { %v498_v60 = vadd.f32 %v1264_v59, %v478_v58 }
 0x210   :  { %v514_v62 = vmax.f32 %v498_v60, 0.0 }
 0x212   :  { %v525_v63 = vpack.c.bf16 %v514_v62, %v513_v61 }
 0x213   :  { %v454_v0 = vpop.f32.mrf.mxu1 }
 0x214   :  { %621 = vmatmul.bf16.gmra.mxu2 %v525_v63  ;;  %v479_v1 = vmul.f32 %v454_v0, %v1160_v32 }
 0x216   :  { %v499_v3 = vadd.f32 %v1264_v59, %v479_v1 }
 0x218   :  { %v515_v6 = vmax.f32 %v499_v3, 0.0 }
 0x21b   :  { %v456_v2 = vpop.f32.mrf.mxu1 }
 0x21c   :  { %v480_v4 = vmul.f32 %v456_v2, %v1167_v35 }
 0x21e   :  { %v500_v5 = vadd.f32 %v1264_v59, %v480_v4 }
 0x220   :  { %v516_v7 = vmax.f32 %v500_v5, 0.0 }
 0x222   :  { %v526_v8 = vpack.c.bf16 %v516_v7, %v515_v6 }
 0x223   :  { %v459_v9 = vpop.f32.mrf.mxu1 }
 0x224   :  { %626 = vmatmul.bf16.gmra.mxu2 %v526_v8  ;;  %v481_v10 = vmul.f32 %v459_v9, %v1171_v37 }
 0x226   :  { %v501_v12 = vadd.f32 %v1264_v59, %v481_v10 }
 0x228   :  { %v517_v15 = vmax.f32 %v501_v12, 0.0 }
 0x22b   :  { %v461_v11 = vpop.f32.mrf.mxu1 }
 0x22c   :  { %v482_v13 = vmul.f32 %v461_v11, %v1180_v41 }
 0x22e   :  { %v502_v14 = vadd.f32 %v1264_v59, %v482_v13 }
 0x230   :  { %v518_v16 = vmax.f32 %v502_v14, 0.0 }
 0x232   :  { %v527_v17 = vpack.c.bf16 %v518_v16, %v517_v15 }
 0x233   :  { %v464_v18 = vpop.f32.mrf.mxu1 }
 0x234   :  { %631 = vmatmul.bf16.gmra.mxu2 %v527_v17  ;;  %v483_v19 = vmul.f32 %v464_v18, %v1158_v31 }
 0x236   :  { %v503_v21 = vadd.f32 %v1264_v59, %v483_v19 }
 0x238   :  { %v519_v24 = vmax.f32 %v503_v21, 0.0 }
 0x23b   :  { %v466_v20 = vpop.f32.mrf.mxu1 }
 0x23c   :  { %v484_v22 = vmul.f32 %v466_v20, %v1162_v33 }
 0x23e   :  { %v504_v23 = vadd.f32 %v1264_v59, %v484_v22 }
 0x240   :  { %v520_v30 = vmax.f32 %v504_v23, 0.0 }
 0x242   :  { %v528_v38 = vpack.c.bf16 %v520_v30, %v519_v24 }
 0x244   :  { %636 = vmatmul.bf16.gmra.mxu2 %v528_v38 }
 0x257   :  { %v602_v44 = vpop.f32.mrf.mxu2 }
 0x258   :  { %v642_v50 = vmul.f32 %v602_v44, %v1188_v46  ;;  %v1324_v44 = vld [vmem:[%s1367_s6] ss:$0 sm:$0xff]  ;;  %s1043_s6 = smov [#allocation7]  }
 0x259   :  { %s771_s25 = sshll.u32 %s1043_s6, 4  ;;  %s772_s25 = int_to_ptr.vmem [resolvable:$true] %s771_s25 }
 0x25f   :  { %v604_v48 = vpop.f32.mrf.mxu2 }
 0x260   :  { %v643_v51 = vmul.f32 %v604_v48, %v1190_v47 }
 0x262   :  { %v658_v53 = vpack.c.bf16 %v643_v51, %v642_v50 }
 0x267   :  { %v607_v55 = vpop.f32.mrf.mxu2 }
 0x268   :  { %v644_v58 = vmul.f32 %v607_v55, %v1184_v43 }
 0x26f   :  { %v609_v57 = vpop.f32.mrf.mxu2 }
 0x270   :  { %v645_v60 = vmul.f32 %v609_v57, %v1196_v54 }
 0x272   :  { %v659_v61 = vpack.c.bf16 %v645_v60, %v644_v58 }
 0x277   :  { %v612_v62 = vpop.f32.mrf.mxu2 }
 0x278   :  { %v646_v63 = vmul.f32 %v612_v62, %v1194_v52 }
 0x27f   :  { %v614_v59 = vpop.f32.mrf.mxu2 }
 0x280   :  { %v647_v0 = vmul.f32 %v614_v59, %v1182_v42 }
 0x282   :  { %v660_v1 = vpack.c.bf16 %v647_v0, %v646_v63 }
 0x287   :  { %v617_v2 = vpop.f32.mrf.mxu2 }
 0x288   :  { %v648_v4 = vmul.f32 %v617_v2, %v1176_v39 }
 0x28f   :  { %v619_v3 = vpop.f32.mrf.mxu2 }
 0x290   :  { %v649_v5 = vmul.f32 %v619_v3, %v1178_v40 }
 0x292   :  { %v661_v6 = vpack.c.bf16 %v649_v5, %v648_v4 }
 0x297   :  { %v622_v7 = vpop.f32.mrf.mxu2 }
 0x298   :  { %v650_v30 = vmul.f32 %v622_v7, %v1169_v36 }
 0x29f   :  { %v624_v8 = vpop.f32.mrf.mxu2 }
 0x2a0   :  { %v651_v23 = vmul.f32 %v624_v8, %v1186_v45 }
 0x2a2   :  { %v662_v38 = vpack.c.bf16 %v651_v23, %v650_v30 }
 0x2a7   :  { %v627_v9 = vpop.f32.mrf.mxu2 }
 0x2a8   :  { %v652_v22 = vmul.f32 %v627_v9, %v1160_v32 }
 0x2af   :  { %v629_v10 = vpop.f32.mrf.mxu2 }
 0x2b0   :  { %v653_v20 = vmul.f32 %v629_v10, %v1167_v35 }
 0x2b2   :  { %v663_v24 = vpack.c.bf16 %v653_v20, %v652_v22 }
 0x2b7   :  { %v632_v11 = vpop.f32.mrf.mxu2 }
 0x2b8   :  { %v654_v19 = vmul.f32 %v632_v11, %v1171_v37 }
 0x2bf   :  { %v634_v12 = vpop.f32.mrf.mxu2 }
 0x2c0   :  { %v655_v17 = vmul.f32 %v634_v12, %v1180_v41 }
 0x2c2   :  { %v664_v21 = vpack.c.bf16 %v655_v17, %v654_v19 }
 0x2c7   :  { %v637_v13 = vpop.f32.mrf.mxu2 }
 0x2c8   :  { %v656_v15 = vmul.f32 %v637_v13, %v1158_v31 }
 0x2cf   :  { %v639_v14 = vpop.f32.mrf.mxu2 }
 0x2d0   :  { %v657_v16 = vmul.f32 %v639_v14, %v1162_v33 }
 0x2d2   :  { %v665_v18 = vpack.c.bf16 %v657_v16, %v656_v15 }
 0x2d4   :  { %666 = vmatpush.bf16.msra.mxu3 %v665_v18 }
 0x2d8   :  { %667 = vmatpush.bf16.msra.mxu3 %v664_v21 }
 0x2dc   :  { %668 = vmatpush.bf16.msra.mxu3 %v663_v24 }
 0x2e0   :  { %669 = vmatpush.bf16.msra.mxu3 %v662_v38 }
 0x2e4   :  { %670 = vmatpush.bf16.msra.mxu3 %v661_v6 }
 0x2e8   :  { %671 = vmatpush.bf16.msra.mxu3 %v660_v1 }
 0x2ec   :  { %672 = vmatpush.bf16.msra.mxu3 %v659_v61 }
 0x2f0   :  { %673 = vmatpush.bf16.msra.mxu3 %v658_v53 }
 0x2f3   :  { %674 = vmatmul.bf16.vlgmr.msra.gmra.mxu3 %v1215_v25 }
 0x303   :  { %679 = vmatmul.bf16.gmra.mxu3 %v1221_v26 }
 0x313   :  { %684 = vmatmul.bf16.gmra.mxu3 %v1227_v27 }
 0x323   :  { %689 = vmatmul.bf16.gmra.mxu3 %v1233_v28 }
 0x333   :  { %694 = vmatmul.bf16.gmra.mxu3 %v1239_v29 }
 0x343   :  { %699 = vmatmul.bf16.gmra.mxu3 %v1245_v34 }
 0x353   :  { %704 = vmatmul.bf16.gmra.mxu3 %v1251_v49 }
 0x363   :  { %709 = vmatmul.bf16.gmra.mxu3 %v1257_v56 }
 0x376   :  { %v675_v25 = vpop.f32.mrf.mxu3 }
 0x377   :  { %v715_v26 = vmul.f32 %v675_v25, %v1188_v46 }
 0x379   :  { %v735_v27 = vadd.f32 %v1324_v44, %v715_v26 }
 0x37b   :  { %751 = vst [vmem:[#allocation7] sm:$0xff] %v735_v27 }
 0x37e   :  { %v677_v28 = vpop.f32.mrf.mxu3 }
 0x37f   :  { %v716_v29 = vmul.f32 %v677_v28, %v1190_v47 }
 0x381   :  { %v736_v34 = vadd.f32 %v1324_v44, %v716_v29 }
 0x383   :  { %752 = vst [vmem:[#allocation7 + $0x8] sm:$0xff] %v736_v34 }
 0x386   :  { %v680_v49 = vpop.f32.mrf.mxu3 }
 0x387   :  { %v717_v56 = vmul.f32 %v680_v49, %v1184_v43 }
 0x389   :  { %v737_v48 = vadd.f32 %v1324_v44, %v717_v56 }
 0x38b   :  { %753 = vst [vmem:[#allocation7 + $0x10] sm:$0xff] %v737_v48 }
 0x38e   :  { %v682_v50 = vpop.f32.mrf.mxu3 }
 0x38f   :  { %v718_v51 = vmul.f32 %v682_v50, %v1196_v54 }
 0x391   :  { %v738_v46 = vadd.f32 %v1324_v44, %v718_v51 }
 0x393   :  { %754 = vst [vmem:[#allocation7 + $0x18] sm:$0xff] %v738_v46 }
 0x396   :  { %v685_v53 = vpop.f32.mrf.mxu3 }
 0x397   :  { %v719_v55 = vmul.f32 %v685_v53, %v1194_v52 }
 0x399   :  { %v739_v47 = vadd.f32 %v1324_v44, %v719_v55 }
 0x39b   :  { %755 = vst [vmem:[#allocation7 + $0x20] sm:$0xff] %v739_v47 }
 0x39e   :  { %v687_v57 = vpop.f32.mrf.mxu3 }
 0x39f   :  { %v720_v58 = vmul.f32 %v687_v57, %v1182_v42 }
 0x3a1   :  { %v740_v43 = vadd.f32 %v1324_v44, %v720_v58 }
 0x3a3   :  { %756 = vst [vmem:[#allocation7 + $0x28] sm:$0xff] %v740_v43 }
 0x3a6   :  { %v690_v60 = vpop.f32.mrf.mxu3 }
 0x3a7   :  { %v721_v61 = vmul.f32 %v690_v60, %v1176_v39 }
 0x3a9   :  { %v741_v54 = vadd.f32 %v1324_v44, %v721_v61 }
 0x3ab   :  { %757 = vst [vmem:[#allocation7 + $0x30] sm:$0xff] %v741_v54 }
 0x3ae   :  { %v692_v62 = vpop.f32.mrf.mxu3 }
 0x3af   :  { %v722_v59 = vmul.f32 %v692_v62, %v1178_v40 }
 0x3b1   :  { %v742_v52 = vadd.f32 %v1324_v44, %v722_v59 }
 0x3b3   :  { %758 = vst [vmem:[#allocation7 + $0x38] sm:$0xff] %v742_v52 }
 0x3b6   :  { %v695_v63 = vpop.f32.mrf.mxu3 }
 0x3b7   :  { %v723_v0 = vmul.f32 %v695_v63, %v1169_v36 }
 0x3b9   :  { %v743_v42 = vadd.f32 %v1324_v44, %v723_v0 }
 0x3bb   :  { %759 = vst [vmem:[#allocation7 + $0x40] sm:$0xff] %v743_v42 }
 0x3be   :  { %v697_v1 = vpop.f32.mrf.mxu3 }
 0x3bf   :  { %v724_v2 = vmul.f32 %v697_v1, %v1186_v45 }
 0x3c1   :  { %v744_v39 = vadd.f32 %v1324_v44, %v724_v2 }
 0x3c3   :  { %760 = vst [vmem:[#allocation7 + $0x48] sm:$0xff] %v744_v39 }
 0x3c6   :  { %v700_v3 = vpop.f32.mrf.mxu3 }
 0x3c7   :  { %v725_v4 = vmul.f32 %v700_v3, %v1160_v32 }
 0x3c9   :  { %v745_v40 = vadd.f32 %v1324_v44, %v725_v4 }
 0x3cb   :  { %761 = vst [vmem:[#allocation7 + $0x50] sm:$0xff] %v745_v40 }
 0x3ce   :  { %v702_v5 = vpop.f32.mrf.mxu3 }
 0x3cf   :  { %v726_v6 = vmul.f32 %v702_v5, %v1167_v35 }
 0x3d1   :  { %v746_v36 = vadd.f32 %v1324_v44, %v726_v6 }
 0x3d3   :  { %762 = vst [vmem:[#allocation7 + $0x58] sm:$0xff] %v746_v36 }
 0x3d6   :  { %v705_v7 = vpop.f32.mrf.mxu3 }
 0x3d7   :  { %v727_v8 = vmul.f32 %v705_v7, %v1171_v37 }
 0x3d9   :  { %v747_v45 = vadd.f32 %v1324_v44, %v727_v8 }
 0x3db   :  { %763 = vst [vmem:[#allocation7 + $0x60] sm:$0xff] %v747_v45 }
 0x3de   :  { %v707_v9 = vpop.f32.mrf.mxu3 }
 0x3df   :  { %v728_v10 = vmul.f32 %v707_v9, %v1180_v41 }
 0x3e1   :  { %v748_v32 = vadd.f32 %v1324_v44, %v728_v10 }
 0x3e3   :  { %764 = vst [vmem:[#allocation7 + $0x68] sm:$0xff] %v748_v32 }
 0x3e6   :  { %v710_v11 = vpop.f32.mrf.mxu3 }
 0x3e7   :  { %v729_v12 = vmul.f32 %v710_v11, %v1158_v31 }
 0x3e9   :  { %v749_v35 = vadd.f32 %v1324_v44, %v729_v12 }
 0x3eb   :  { %765 = vst [vmem:[#allocation7 + $0x70] sm:$0xff] %v749_v35 }
 0x3ee   :  { %v712_v37 = vpop.f32.mrf.mxu3 }
 0x3ef   :  { %v730_v13 = vmul.f32 %v712_v37, %v1162_v33 }
 0x3f1   :  { %v750_v41 = vadd.f32 %v1324_v44, %v730_v13 }
 0x3f3   :  { %766 = vst [vmem:[#allocation7 + $0x78] sm:$0xff] %v750_v41 }
 0x3f4   :  { %779 = dma.vmem_to_hbm [thread:$0]  %s772_s25, 2048, %s774_s1, [#allocation4], %s1044_s28, %s1044_s28, %s1045_s29  }
 0x3f5   :  { %1036 = dma.done.wait [#allocation4], 2048  }
 0x3f6   :  { %1037 = vsyncadd [#allocation4], 4294965248 }
 0x3f7   :  { %784 = vsyncpa [#allocation3], 1 }
 0x3f8   :  { %785 = vsyncpa [#allocation6], 1 }
 0x3f9   :  { %786 = vsyncpa [#allocation4], 1 }

</bundles_post_ra>
